<compile_context>
chip_gen: v5e
topology: v5e:2x2
jax: 0.10.0
libtpu: 0.0.40
codegen_flags: <defaults>
</compile_context>

<pallas_src>
import functools

import jax
import jax.numpy as jnp
from jax.experimental import pallas as pl
from jax.experimental.pallas import tpu as pltpu

EPS = 1e-7


def _round_up(x: int, m: int) -> int:
    return (x + m - 1) // m * m


def _zencoder_fused_kernel(x_ref, w_ref, b_ref, out_ref, *, n_loc_tiles):
    # One fused matmul for both heads; bf16 operands, f32 accumulation on MXU.
    acc = jnp.dot(x_ref[...], w_ref[...], preferred_element_type=jnp.float32)
    lin = acc + b_ref[...]                      # (TM, TN) f32, bias broadcast

    # Tiles j <  n_loc_tiles carry the `loc` head (identity epilogue);
    # tiles j >= n_loc_tiles carry the `std` head (softplus epilogue).
    is_std = pl.program_id(1) >= n_loc_tiles

    @pl.when(is_std)
    def _():
        # Numerically stable softplus on the EUP, then +EPS.
        out_ref[...] = (jnp.logaddexp(lin, 0.0) + EPS).astype(out_ref.dtype)

    @pl.when(jnp.logical_not(is_std))
    def _():
        out_ref[...] = lin.astype(out_ref.dtype)


def zencoder_forward_pallas(x, w_loc, b_loc, w_std, b_std):
    """x: (B, Fin); w_*: (Fin, Fout) (pre-transposed vs nn.Linear); b_*: (Fout,).

    Returns (loc, std), both (B, Fout) float32."""
    x = jnp.asarray(x, jnp.float32)
    w_loc = jnp.asarray(w_loc, jnp.float32)
    w_std = jnp.asarray(w_std, jnp.float32)
    b_loc = jnp.asarray(b_loc, jnp.float32).reshape(-1)
    b_std = jnp.asarray(b_std, jnp.float32).reshape(-1)

    B, Fin = x.shape
    Fout = w_loc.shape[1]

    # ---- padded / tiled geometry -------------------------------------------
    Kp = _round_up(Fin, 128)                 # contraction dim, lane aligned
    Fp = _round_up(Fout, 128)                # per-head lane-dense width
    TN = 256 if Fp % 256 == 0 else 128       # output tile width (128-multiple)
    Fcat = 2 * Fp                            # fused (loc | std) output width
    n_loc_tiles = Fp // TN

    TM = 256                                 # batch tile
    while TM > 8 and TM * Kp * 2 > (4 << 20):   # keep bf16 x-tile under ~4 MiB
        TM //= 2
    if B <= TM:
        B_pad = _round_up(max(B, 8), 8)
        TM = B_pad
    else:
        B_pad = _round_up(B, TM)

    # ---- pad + fuse operands (zero padding does not perturb the matmul) ----
    x_p = jnp.pad(x, ((0, B_pad - B), (0, Kp - Fin))).astype(jnp.bfloat16)
    w_cat = jnp.concatenate(
        [jnp.pad(w_loc, ((0, Kp - Fin), (0, Fp - Fout))),
         jnp.pad(w_std, ((0, Kp - Fin), (0, Fp - Fout)))],
        axis=1,
    ).astype(jnp.bfloat16)                                     # (Kp, 2*Fp)
    b_cat = jnp.concatenate(
        [jnp.pad(b_loc, (0, Fp - Fout)), jnp.pad(b_std, (0, Fp - Fout))]
    ).reshape(1, Fcat)                                         # (1, 2*Fp) f32

    # ---- VMEM budget: double-buffered x / w / b / out tiles + headroom -----
    est = 2 * (TM * Kp * 2 + Kp * TN * 2 + 8 * TN * 4 + TM * TN * 4)
    vmem_limit = int(min(64 << 20, max(32 << 20, 2 * est)))    # v7x-safe cap
    # TODO(synk): add a K grid axis + f32 accumulator if Fin grows past ~16k so
    #             the weight tile stays inside v7x's 64 MiB VMEM.

    grid = (B_pad // TM, Fcat // TN)
    out = pl.pallas_call(
        functools.partial(_zencoder_fused_kernel, n_loc_tiles=n_loc_tiles),
        out_shape=jax.ShapeDtypeStruct((B_pad, Fcat), jnp.float32),
        grid=grid,
        in_specs=[
            pl.BlockSpec((TM, Kp), lambda i, j: (i, 0)),   # x resident over j
            pl.BlockSpec((Kp, TN), lambda i, j: (0, j)),   # fused weights
            pl.BlockSpec((1, TN), lambda i, j: (0, j)),    # fused bias row
        ],
        out_specs=pl.BlockSpec((TM, TN), lambda i, j: (i, j)),
        compiler_params=pltpu.CompilerParams(
            dimension_semantics=("parallel", "parallel"),
            vmem_limit_bytes=vmem_limit,
        ),
    )(x_p, w_cat, b_cat)

    loc = out[:B, :Fout]
    std = out[:B, Fp:Fp + Fout]
    return loc, std


def _zencoder_xla(x, w_loc, b_loc, w_std, b_std):
    b_loc = jnp.asarray(b_loc).reshape(1, -1)
    b_std = jnp.asarray(b_std).reshape(1, -1)
    loc = x @ w_loc + b_loc
    std = jax.nn.softplus(x @ w_std + b_std) + EPS
    return loc, std


def zencoder_forward(x, w_loc, b_loc, w_std, b_std, *, force_pallas=False):
    """ZEncoder.forward -> (loc, std). Tiny shapes route to plain XLA since a
    pallas_call with sub-(8,128) tiles is pure fixed overhead."""
    B, Fin = x.shape
    Fout = w_loc.shape[1]
    if not force_pallas and B * max(Fin, 2 * Fout) < 128 * 128:
        return _zencoder_xla(x, w_loc, b_loc, w_std, b_std)
    return zencoder_forward_pallas(x, w_loc, b_loc, w_std, b_std)


if __name__ == "__main__":
    key = jax.random.PRNGKey(0)
    k_x, k_wl, k_bl, k_ws, k_bs = jax.random.split(key, 5)

    # Small but kernel-worthy encoder shapes (features -> latent).
    batch, in_features, out_features = 128, 200, 50

    x = jax.random.normal(k_x, (batch, in_features), jnp.float32)
    w_loc = jax.random.normal(k_wl, (in_features, out_features), jnp.float32) * 0.1
    b_loc = jax.random.normal(k_bl, (out_features,), jnp.float32) * 0.1
    w_std = jax.random.normal(k_ws, (in_features, out_features), jnp.float32) * 0.1
    b_std = jax.random.normal(k_bs, (out_features,), jnp.float32) * 0.1

    loc, std = zencoder_forward(x, w_loc, b_loc, w_std, b_std, force_pallas=True)
    jax.block_until_ready((loc, std))

    # Reference in plain f32 JAX.  The kernel uses bf16 MXU operands with f32
    # accumulation, so the tolerance is loosened accordingly.
    loc_ref = x @ w_loc + b_loc[None, :]
    std_ref = jax.nn.softplus(x @ w_std + b_std[None, :]) + EPS
    assert loc.shape == (batch, out_features) and std.shape == (batch, out_features)
    assert jnp.allclose(loc, loc_ref, atol=5e-2, rtol=5e-2), float(
        jnp.max(jnp.abs(loc - loc_ref)))
    assert jnp.allclose(std, std_ref, atol=5e-2, rtol=5e-2), float(
        jnp.max(jnp.abs(std - std_ref)))
    assert bool(jnp.all(std > 0))

    print("KERNEL_OK")
</pallas_src>

<mosaic_0001>
module attributes {stable_mosaic.version = 11 : i64} {
  func.func @_zencoder_fused_kernel(%arg0: i32, %arg1: i32, %arg2: memref<128x256xbf16, #tpu.memory_space<vmem>>, %arg3: memref<256x128xbf16, #tpu.memory_space<vmem>>, %arg4: memref<1x128xf32, #tpu.memory_space<vmem>>, %arg5: memref<128x128xf32, #tpu.memory_space<vmem>>) attributes {dimension_semantics = [#tpu.dimension_semantics<parallel>, #tpu.dimension_semantics<parallel>], iteration_bounds = array<i64: 1, 2>, scalar_prefetch = 0 : i64, scratch_operands = 0 : i64, tpu.core_type = #tpu.core_type<tc>, window_params = [{transform_indices = @transform_0, window_bounds = array<i64: 128, 256>}, {transform_indices = @transform_1, window_bounds = array<i64: 256, 128>}, {transform_indices = @transform_2, window_bounds = array<i64: 1, 128>}, {transform_indices = @transform_3, window_bounds = array<i64: 128, 128>}]} {
    %c0 = arith.constant 0 : index
    %c0_0 = arith.constant 0 : index
    %0 = vector.load %arg2[%c0, %c0_0] : memref<128x256xbf16, #tpu.memory_space<vmem>>, vector<128x256xbf16>
    %c0_1 = arith.constant 0 : index
    %c0_2 = arith.constant 0 : index
    %1 = vector.load %arg3[%c0_1, %c0_2] : memref<256x128xbf16, #tpu.memory_space<vmem>>, vector<256x128xbf16>
    %cst = arith.constant dense<0.000000e+00> : vector<128x128xf32>
    %2 = tpu.matmul %0, %1, %cst {dimension_numbers = #tpu.dot_dimension_numbers<[1], [0], [0], [1], [0, 0, 1, 1], [], []>} : vector<128x256xbf16>, vector<256x128xbf16>, vector<128x128xf32> -> vector<128x128xf32>
    %c0_3 = arith.constant 0 : index
    %c0_4 = arith.constant 0 : index
    %3 = vector.load %arg4[%c0_3, %c0_4] : memref<1x128xf32, #tpu.memory_space<vmem>>, vector<1x128xf32>
    %4 = vector.broadcast %3 : vector<1x128xf32> to vector<128x128xf32>
    %5 = arith.addf %2, %4 : vector<128x128xf32>
    %c1_i32 = arith.constant 1 : i32
    %6 = arith.cmpi sge, %arg1, %c1_i32 : i32
    %7 = arith.extui %6 : i1 to i32
    %c0_i32 = arith.constant 0 : i32
    %8 = arith.cmpi ne, %7, %c0_i32 : i32
    scf.if %8 {
      %cst_6 = arith.constant 0.000000e+00 : f32
      %12 = vector.broadcast %cst_6 : f32 to vector<128x128xf32>
      %13 = arith.maximumf %5, %12 : vector<128x128xf32>
      %14 = vector.broadcast %cst_6 : f32 to vector<128x128xf32>
      %15 = arith.subf %5, %14 : vector<128x128xf32>
      %16 = arith.cmpf one, %15, %15 : vector<128x128xf32>
      %17 = vector.broadcast %cst_6 : f32 to vector<128x128xf32>
      %18 = arith.addf %5, %17 : vector<128x128xf32>
      %19 = math.absf %15 : vector<128x128xf32>
      %cst_7 = arith.constant 0.000000e+00 : f32
      %20 = vector.broadcast %cst_7 : f32 to vector<128x128xf32>
      %21 = arith.subf %20, %19 : vector<128x128xf32>
      %22 = math.exp %21 : vector<128x128xf32>
      %23 = math.log1p %22 : vector<128x128xf32>
      %24 = arith.addf %13, %23 : vector<128x128xf32>
      %25 = arith.select %16, %18, %24 : vector<128x128xi1>, vector<128x128xf32>
      %cst_8 = arith.constant 1.000000e-07 : f32
      %26 = vector.broadcast %cst_8 : f32 to vector<128x128xf32>
      %27 = arith.addf %25, %26 : vector<128x128xf32>
      %c0_9 = arith.constant 0 : index
      %c0_10 = arith.constant 0 : index
      %28 = vector.load %arg5[%c0_9, %c0_10] : memref<128x128xf32, #tpu.memory_space<vmem>>, vector<128x128xf32>
      tpu.vector_store %arg5[%c0_9, %c0_10], %27 {strides = array<i32>} : memref<128x128xf32, #tpu.memory_space<vmem>>, vector<128x128xf32>,
    } else {
    }
    %true = arith.constant true
    %9 = arith.xori %6, %true : i1
    %10 = arith.extui %9 : i1 to i32
    %c0_i32_5 = arith.constant 0 : i32
    %11 = arith.cmpi ne, %10, %c0_i32_5 : i32
    scf.if %11 {
      %c0_6 = arith.constant 0 : index
      %c0_7 = arith.constant 0 : index
      %12 = vector.load %arg5[%c0_6, %c0_7] : memref<128x128xf32, #tpu.memory_space<vmem>>, vector<128x128xf32>
      tpu.vector_store %arg5[%c0_6, %c0_7], %5 {strides = array<i32>} : memref<128x128xf32, #tpu.memory_space<vmem>>, vector<128x128xf32>,
    } else {
    }
    return
  }
  func.func @transform_0(%arg0: i32, %arg1: i32) -> (i32, i32) {
    %c0_i32 = arith.constant 0 : i32
    %c0_i32_0 = arith.constant 0 : i32
    return %arg0, %c0_i32 : i32, i32
  }
  func.func @transform_1(%arg0: i32, %arg1: i32) -> (i32, i32) {
    %c0_i32 = arith.constant 0 : i32
    %c0_i32_0 = arith.constant 0 : i32
    return %c0_i32, %arg1 : i32, i32
  }
  func.func @transform_2(%arg0: i32, %arg1: i32) -> (i32, i32) {
    %c0_i32 = arith.constant 0 : i32
    %c0_i32_0 = arith.constant 0 : i32
    return %c0_i32, %arg1 : i32, i32
  }
  func.func @transform_3(%arg0: i32, %arg1: i32) -> (i32, i32) {
    %c0_i32 = arith.constant 0 : i32
    return %arg0, %arg1 : i32, i32
  }
}

</mosaic_0001>

<bundles_post_ra>
// kernel: tpu_custom_call.1
= control target key start
LH: loop header
LB: loop body
LE: loop exit
PB: predicated region body
PF: predicated region fallthrough
CT: control target
= control target key end

     0   :  { %8 = vsyncpa [#allocation3], 0  ;;  %s2105_s0 = inlined_call_operand.hbm [shape: bf16[128,256], index: 0, kind: input, shape index: {}]   ;;  %s2106_s1 = inlined_call_operand.hbm [shape: bf16[256,256], index: 1, kind: input, shape index: {}]   ;;  %s2107_s2 = inlined_call_operand.hbm [shape: f32[1,256], index: 2, kind: input, shape index: {}]   ;;  %s2108_s3 = inlined_call_operand.hbm [shape: f32[128,256], index: 3, kind: output, shape index: {}]  }
   0x1   :  { %9 = vsyncpa [#allocation6], 0 }
   0x2   :  { %11 = vsyncpa [#allocation6 + $0x1], 0 }
   0x3   :  { %12 = vsyncpa [#allocation4], 0 }
   0x4   :  { %14 = vsyncpa [#allocation4 + $0x1], 0  ;;  %s1614_s12 = smov 0   ;;  %s1616_s13 = smov 0  }
   0x5   :  { %s1618_s14 = smov 0   ;;  %s1620_s15 = smov 0  }
   0x6   :  { %s1622_s16 = smov 0   ;;  %s1624_s17 = smov 0  }
   0x7 LB: > { %s29_s18 = sadd.s32 1, %s1580_s16  ;;  %s65_s19 = sadd.s32 1, %s1572_s14  ;;  %s1584_s17 = sphi %s1624_s17, %s20_s17   ;;  %s1580_s16 = sphi %s1622_s16, %s2143_s16   ;;  %s1576_s15 = sphi %s1620_s15, %s2142_s15   ;;  %s1572_s14 = sphi %s1618_s14, %s2141_s14   ;;  %s1568_s13 = sphi %s1616_s13, %s2140_s13   ;;  %s1564_s12 = sphi %s1614_s12, %s2139_s12  }
   0x8   : > { %p30_p0 = scmp.ge.s32.totalorder %s29_s18, 2  ;;  %p72_p1 = scmp.ne.s32.totalorder %s1572_s14, %s1568_s13 }
   0x9   : > { %p73_p2 = scmp.eq.s32.totalorder %s1584_s17, 0  ;;  %p1069_p4 = scmp.ge.s32.totalorder %s1584_s17, 2 }
   0xa   : > { %s2145_s18 = smov (%p30_p0, %s29_s18), 0  ;;  %p1284_p5 = scmp.lt.s32.totalorder %s1584_s17, 2 }
   0xb   : > { %p1654_p3 = por %p73_p2, %p72_p1  ;;  %s62_s21 = ssub.s32 %s1580_s16, %s2145_s18 }
   0xc   : > { %p63_p6 = scmp.eq.s32.totalorder %s62_s21, 0  ;;  %s174_s22 = sand.u32 1, %s1584_s17  }
   0xd   : > { %s176_s23 = sand.u32 1, %s1572_s14   ;;  %s1071_s26 = sshll.u32 %s1580_s16, 2 }
   0xe   : > { %s1665_s24 = scalar_select %p63_p6, %s1572_s14, %s65_s19  }
   0xf   : > { %s1070_s25 = sshll.u32 %s176_s23, 7  ;;  %s182_s29 = scalar_lea.hbm %s2106_s1, %s1071_s26 }
  0x10   : > { %s183_s30 = sshll.u32 %s182_s29, 4  ;;  %s178_s4 = scalar_lea.vmem [#allocation5], %s1070_s25  ;;  %s184_s30 = int_to_ptr.hbm [resolvable:$true] %s183_s30 }
  0x11   : > { %s185_s5 = sshll.u32 %s178_s4, 4  ;;  %p1677_p7 = pnand %p1284_p5, %p1654_p3  ;;  %s186_s5 = int_to_ptr.vmem [resolvable:$true] %s185_s5 }
  0x12   : > { %s1681_s7 = scalar_lea.sflag [#allocation6], %s174_s22  ;;  %s1586_s8 = smov 128  }
  0x13   : > { %s1587_s9 = smov 64   ;;  %s1588_s10 = smov 4  }
  0x14   : > { %1275 = dma.hbm_to_vmem [thread:$0]  (!%p1677_p7), %s184_s30, 2048, %s186_s5, %s1681_s7, %s1586_s8, %s1587_s9, %s1588_s10  }
  0x15   : > { %s1688_s11 = sadd.s32 4294967295, %s1584_s17   ;;  %s1066_s19 = sadd.s32 4294967294, %s1584_s17  }
  0x16   : > { %p78_p8 = scmp.ne.s32.totalorder %s1568_s13, %s1564_s12  ;;  %p79_p9 = scmp.eq.s32.totalorder %s1688_s11, 0 }
  0x17   : > { %p130_p10 = scmp.eq.s32.totalorder %s1688_s11, 1  ;;  %p136_p11 = scmp.eq.s32.totalorder %s1066_s19, 1 }
  0x18   : > { %p1697_p12 = por %p79_p9, %p78_p8  ;;  %p1067_p13 = scmp.ge.s32.totalorder %s1584_s17, 1 }
  0x19   : > { %p1705_p0 = por %p130_p10, %p72_p1  ;;  %p1709_p2 = por %p136_p11, %p78_p8 }
  0x1a   : > { %p143_p3 = scmp.lt.s32.totalorder %s1584_s17, 3  ;;  %s158_s27 = sshll.u32 %s2105_s0, 4  ;;  %s159_s27 = int_to_ptr.hbm [resolvable:$true] %s158_s27 }
  0x1b   : > { %s1589_s29 = smov [#allocation2]   ;;  %s201_s9 = scalar_lea.hbm %s2107_s2, %s1580_s16 }
  0x1c   : > { %p1717_p5 = pnand %p1067_p13, %p143_p3  ;;  %s160_s30 = sshll.u32 %s1589_s29, 4  ;;  %s161_s30 = int_to_ptr.vmem [resolvable:$true] %s160_s30 }
  0x1d   : > { %s203_s10 = sshll.u32 %s201_s9, 4  ;;  %s198_s19 = scalar_lea.vmem [#allocation7], %s176_s23  ;;  %s204_s10 = int_to_ptr.hbm [resolvable:$true] %s203_s10 }
  0x1e   : > { %p1268_p1 = pneg %p1717_p5  ;;  %s205_s25 = sshll.u32 %s198_s19, 4  ;;  %s206_s25 = int_to_ptr.vmem [resolvable:$true] %s205_s25 }
  0x1f   : > { %s1590_s26 = smov 8   ;;  %214 = sbr.rel (%p1717_p5) target bundleno = 390 (0x186), region = 32 }
  0x20   : > { %p1269_p6 = pnand %p1268_p1, %p79_p9 }
  0x21   : > { %1278 = dma.hbm_to_vmem [thread:$0]  (!%p1677_p7), %s204_s10, 16, %s206_s25, %s1681_s7  }
  0x22   : > { %1271 = dma.hbm_to_vmem [thread:$0]  (!%p1269_p6), %s159_s27, 2048, %s161_s30, [#allocation3], %s1586_s8, %s1586_s8, %s1590_s26  }
  0x24   : > { %1551 = dma.done.wait (%p79_p9), [#allocation3], 2048  }
  0x25   : > { %1553 = vsyncadd (%p79_p9), [#allocation3], 4294965248  ;;  %s221_s23 = sand.u32 1, %s1688_s11   ;;  %s1744_s29 = sand.u32 1, %s1568_s13  }
  0x26   : > { %s1074_s8 = sshll.u32 %s1744_s29, 7  ;;  %s222_s6 = scalar_lea.sflag [#allocation6], %s221_s23 }
  0x27   : > { %s1749_s7 = scalar_lea.vmem [#allocation5], %s1074_s8 }
  0x28   : > { %1555 = dma.done.wait (%p1697_p12), %s222_s6, 2064  }
  0x29   : > { %1557 = vsyncadd (%p1697_p12), %s222_s6, 4294965232  ;;  %v1233_v0 = vld [vmem:[%s1749_s7 + $0x38] sm:$0xff]  ;;  %v1232_v2 = vld [vmem:[%s1749_s7 + $0x30] sm:$0xff]  ;;  %s234_s11 = scalar_lea.vmem [#allocation7], %s1744_s29  ;;  %s1808_s20 = scalar_lea.vmem [#allocation8], %s1074_s8 }
  0x2a   : > { %v1241_v1 = vld [vmem:[%s1749_s7 + $0x78] sm:$0xff]  ;;  %492 = vmatpush.bf16.msra.mxu0 %v1233_v0  ;;  %1242 = vmatpush.bf16.msra.mxu2 %v1233_v0  ;;  %v1240_v3 = vld [vmem:[%s1749_s7 + $0x70] sm:$0xff]  ;;  %v1231_v4 = vld [vmem:[%s1749_s7 + $0x28] sm:$0xff]  ;;  %p1204_p7 = scmp.lt.s32.totalorder %s1576_s15, 1 }
  0x2b   : > { %541 = vmatpush.bf16.msra.mxu1 %v1241_v1  ;;  %1250 = vmatpush.bf16.msra.mxu3 %v1241_v1  ;;  %v1239_v5 = vld [vmem:[%s1749_s7 + $0x68] sm:$0xff]  ;;  %v1230_v6 = vld [vmem:[%s1749_s7 + $0x20] sm:$0xff]  ;;  %v1229_v8 = vld [vmem:[%s1749_s7 + $0x18] sm:$0xff] }
  0x2c   : > { %v1238_v7 = vld [vmem:[%s1749_s7 + $0x60] sm:$0xff]  ;;  %v1237_v9 = vld [vmem:[%s1749_s7 + $0x58] sm:$0xff]  ;;  %v1228_v10 = vld [vmem:[%s1749_s7 + $0x10] sm:$0xff] }
  0x2d   : > { %v1236_v11 = vld [vmem:[%s1749_s7 + $0x50] sm:$0xff]  ;;  %v1227_v12 = vld [vmem:[%s1749_s7 + $0x8] sm:$0xff]  ;;  %v1226_v14 = vld [vmem:[%s1749_s7] sm:$0xff] }
  0x2e   : > { %493 = vmatpush.bf16.msra.mxu0 %v1232_v2  ;;  %1243 = vmatpush.bf16.msra.mxu2 %v1232_v2  ;;  %v1235_v13 = vld [vmem:[%s1749_s7 + $0x48] sm:$0xff]  ;;  %v1234_v15 = vld [vmem:[%s1749_s7 + $0x40] sm:$0xff]  ;;  %v1086_v28 = vld [vmem:[#allocation2 + $0x10] sm:$0xf] }
  0x2f   : > { %542 = vmatpush.bf16.msra.mxu1 %v1240_v3  ;;  %1251 = vmatpush.bf16.msra.mxu3 %v1240_v3  ;;  %v1078_v16 = vld [vmem:[#allocation2] sm:$0xf]  ;;  %v1211_v17 = vld [vmem:[#allocation2 + $0x4] sm:$0xf0]  ;;  %v1210_v20 = vld [vmem:[#allocation2 + $0x4] sm:$0xf] }
  0x30   : > { %v1110_v18 = vld [vmem:[#allocation2 + $0x40] sm:$0xf]  ;;  %v1219_v19 = vld [vmem:[#allocation2 + $0x44] sm:$0xf0]  ;;  %v1080_v21 = vld [vmem:[#allocation2 + $0x8] sm:$0xf0]  ;;  %v1079_v24 = vor.u32 %v1211_v17, %v1078_v16 }
  0x31   : > { %v1218_v22 = vld [vmem:[#allocation2 + $0x44] sm:$0xf]  ;;  %v1112_v23 = vld [vmem:[#allocation2 + $0x48] sm:$0xf0]  ;;  %v1111_v25 = vor.u32 %v1219_v19, %v1110_v18  ;;  %v1083_v26 = vor.u32 %v1210_v20, %v1080_v21  ;;  %v1213_v29 = vld [vmem:[#allocation2 + $0x14] sm:$0xf0] }
  0x32   : > { %494 = vmatpush.bf16.msra.mxu0 %v1231_v4  ;;  %1244 = vmatpush.bf16.msra.mxu2 %v1231_v4  ;;  %v1115_v27 = vor.u32 %v1218_v22, %v1112_v23  ;;  %v1118_v30 = vld [vmem:[#allocation2 + $0x50] sm:$0xf]  ;;  %v1221_v31 = vld [vmem:[#allocation2 + $0x54] sm:$0xf0]  ;;  %v1212_v32 = vld [vmem:[#allocation2 + $0x14] sm:$0xf]  ;;  %v1087_v36 = vor.u32 %v1213_v29, %v1086_v28 }
  0x33   : > { %543 = vmatpush.bf16.msra.mxu1 %v1239_v5  ;;  %1252 = vmatpush.bf16.msra.mxu3 %v1239_v5  ;;  %v1088_v33 = vld [vmem:[#allocation2 + $0x18] sm:$0xf0]  ;;  %v1220_v34 = vld [vmem:[#allocation2 + $0x54] sm:$0xf]  ;;  %v1119_v37 = vor.u32 %v1221_v31, %v1118_v30  ;;  %v1094_v40 = vld [vmem:[#allocation2 + $0x20] sm:$0xf] }
  0x34   : > { %v1120_v35 = vld [vmem:[#allocation2 + $0x58] sm:$0xf0]  ;;  %v1091_v38 = vor.u32 %v1212_v32, %v1088_v33  ;;  %v1215_v41 = vld [vmem:[#allocation2 + $0x24] sm:$0xf0]  ;;  %v1126_v42 = vld [vmem:[#allocation2 + $0x60] sm:$0xf] }
  0x35   : > { %v1123_v39 = vor.u32 %v1220_v34, %v1120_v35  ;;  %v1223_v43 = vld [vmem:[#allocation2 + $0x64] sm:$0xf0]  ;;  %v1214_v44 = vld [vmem:[#allocation2 + $0x24] sm:$0xf]  ;;  %v1096_v45 = vld [vmem:[#allocation2 + $0x28] sm:$0xf0]  ;;  %v1095_v48 = vor.u32 %v1215_v41, %v1094_v40 }
  0x36   : > { %495 = vmatpush.bf16.msra.mxu0 %v1230_v6  ;;  %1245 = vmatpush.bf16.msra.mxu2 %v1230_v6  ;;  %v1222_v46 = vld [vmem:[#allocation2 + $0x64] sm:$0xf]  ;;  %v1128_v47 = vld [vmem:[#allocation2 + $0x68] sm:$0xf0]  ;;  %v1127_v49 = vor.u32 %v1223_v43, %v1126_v42  ;;  %v1099_v50 = vor.u32 %v1214_v44, %v1096_v45  ;;  %v1102_v52 = vld [vmem:[#allocation2 + $0x30] sm:$0xf] }
  0x37   : > { %544 = vmatpush.bf16.msra.mxu1 %v1238_v7  ;;  %1253 = vmatpush.bf16.msra.mxu3 %v1238_v7  ;;  %v1131_v51 = vor.u32 %v1222_v46, %v1128_v47  ;;  %v1217_v53 = vld [vmem:[#allocation2 + $0x34] sm:$0xf0]  ;;  %v1134_v54 = vld [vmem:[#allocation2 + $0x70] sm:$0xf]  ;;  %v1216_v56 = vld [vmem:[#allocation2 + $0x34] sm:$0xf] }
  0x38   : > { %v1225_v55 = vld [vmem:[#allocation2 + $0x74] sm:$0xf0]  ;;  %v1104_v57 = vld [vmem:[#allocation2 + $0x38] sm:$0xf0]  ;;  %v1224_v58 = vld [vmem:[#allocation2 + $0x74] sm:$0xf]  ;;  %v1103_v60 = vor.u32 %v1217_v53, %v1102_v52 }
  0x39   : > { %v1136_v59 = vld [vmem:[#allocation2 + $0x78] sm:$0xf0]  ;;  %v1135_v61 = vor.u32 %v1225_v55, %v1134_v54  ;;  %v1107_v62 = vor.u32 %v1216_v56, %v1104_v57  ;;  %v1343_v0 = vld [vmem:[%s234_s11] ss:$0 sm:$0xff] }
  0x3a   : > { %496 = vmatpush.bf16.msra.mxu0 %v1229_v8  ;;  %1246 = vmatpush.bf16.msra.mxu2 %v1229_v8  ;;  %v1139_v63 = vor.u32 %v1224_v58, %v1136_v59 }
  0x3b   : > { %545 = vmatpush.bf16.msra.mxu1 %v1237_v9  ;;  %1254 = vmatpush.bf16.msra.mxu3 %v1237_v9 }
  0x3e   : > { %497 = vmatpush.bf16.msra.mxu0 %v1228_v10  ;;  %1247 = vmatpush.bf16.msra.mxu2 %v1228_v10 }
  0x3f   : > { %546 = vmatpush.bf16.msra.mxu1 %v1236_v11  ;;  %1255 = vmatpush.bf16.msra.mxu3 %v1236_v11 }
  0x42   : > { %498 = vmatpush.bf16.msra.mxu0 %v1227_v12  ;;  %1248 = vmatpush.bf16.msra.mxu2 %v1227_v12 }
  0x43   : > { %547 = vmatpush.bf16.msra.mxu1 %v1235_v13  ;;  %1256 = vmatpush.bf16.msra.mxu3 %v1235_v13 }
  0x46   : > { %499 = vmatpush.bf16.msra.mxu0 %v1226_v14  ;;  %1249 = vmatpush.bf16.msra.mxu2 %v1226_v14 }
  0x47   : > { %548 = vmatpush.bf16.msra.mxu1 %v1234_v15  ;;  %1257 = vmatpush.bf16.msra.mxu3 %v1234_v15 }
  0x49   : > { %500 = vmatmul.bf16.vlgmr.msra.gmra.mxu0 %v1079_v24  ;;  %520 = vmatmul.bf16.vlgmr.msra.gmra.mxu2 %v1111_v25 }
  0x4a   : > { %549 = vmatmul.bf16.vlgmr.msra.gmra.mxu1 %v1083_v26  ;;  %569 = vmatmul.bf16.vlgmr.msra.gmra.mxu3 %v1115_v27 }
  0x59   : > { %505 = vmatmul.bf16.gmra.mxu0 %v1087_v36  ;;  %525 = vmatmul.bf16.gmra.mxu2 %v1119_v37 }
  0x5a   : > { %554 = vmatmul.bf16.gmra.mxu1 %v1091_v38  ;;  %574 = vmatmul.bf16.gmra.mxu3 %v1123_v39 }
  0x69   : > { %510 = vmatmul.bf16.gmra.mxu0 %v1095_v48  ;;  %530 = vmatmul.bf16.gmra.mxu2 %v1127_v49 }
  0x6a   : > { %559 = vmatmul.bf16.gmra.mxu1 %v1099_v50  ;;  %579 = vmatmul.bf16.gmra.mxu3 %v1131_v51 }
  0x79   : > { %515 = vmatmul.bf16.gmra.mxu0 %v1103_v60  ;;  %535 = vmatmul.bf16.gmra.mxu2 %v1135_v61 }
  0x7a   : > { %564 = vmatmul.bf16.gmra.mxu1 %v1107_v62  ;;  %584 = vmatmul.bf16.gmra.mxu3 %v1139_v63 }
  0xc6   : > { %v501_v1 = vpop.f32.mrf.mxu0 }
  0xc7   : > { %v502_v2 = vadd.f32 %v1343_v0, %v501_v1  ;;  %v550_v3 = vpop.f32.mrf.mxu1 }
  0xc9   : > { %v1774_v4 = vadd.f32 %v550_v3, %v502_v2 }
  0xcc   : > { %v521_v5 = vpop.f32.mrf.mxu2 }
  0xcd   : > { %v522_v6 = vadd.f32 %v1343_v0, %v521_v5  ;;  %v570_v7 = vpop.f32.mrf.mxu3 }
  0xce   : > { %v503_v8 = vpop.f32.mrf.mxu0 }
  0xcf   : > { %v1776_v9 = vadd.f32 %v570_v7, %v522_v6  ;;  %v504_v10 = vadd.f32 %v1343_v0, %v503_v8  ;;  %v552_v11 = vpop.f32.mrf.mxu1 }
  0xd1   : > { %v1778_v12 = vadd.f32 %v552_v11, %v504_v10 }
  0xd4   : > { %v523_v13 = vpop.f32.mrf.mxu2 }
  0xd5   : > { %v524_v14 = vadd.f32 %v1343_v0, %v523_v13  ;;  %v572_v15 = vpop.f32.mrf.mxu3 }
  0xd6   : > { %v506_v16 = vpop.f32.mrf.mxu0 }
  0xd7   : > { %v1780_v17 = vadd.f32 %v572_v15, %v524_v14  ;;  %v507_v18 = vadd.f32 %v1343_v0, %v506_v16  ;;  %v555_v19 = vpop.f32.mrf.mxu1 }
  0xd9   : > { %v1782_v20 = vadd.f32 %v555_v19, %v507_v18 }
  0xdc   : > { %v526_v21 = vpop.f32.mrf.mxu2 }
  0xdd   : > { %v527_v22 = vadd.f32 %v1343_v0, %v526_v21  ;;  %v575_v23 = vpop.f32.mrf.mxu3 }
  0xde   : > { %v508_v24 = vpop.f32.mrf.mxu0 }
  0xdf   : > { %v1784_v25 = vadd.f32 %v575_v23, %v527_v22  ;;  %v509_v26 = vadd.f32 %v1343_v0, %v508_v24  ;;  %v557_v27 = vpop.f32.mrf.mxu1 }
  0xe1   : > { %v1786_v28 = vadd.f32 %v557_v27, %v509_v26 }
  0xe4   : > { %v528_v29 = vpop.f32.mrf.mxu2 }
  0xe5   : > { %v529_v30 = vadd.f32 %v1343_v0, %v528_v29  ;;  %v577_v31 = vpop.f32.mrf.mxu3 }
  0xe6   : > { %v511_v32 = vpop.f32.mrf.mxu0 }
  0xe7   : > { %v1788_v33 = vadd.f32 %v577_v31, %v529_v30  ;;  %v512_v34 = vadd.f32 %v1343_v0, %v511_v32  ;;  %v560_v35 = vpop.f32.mrf.mxu1 }
  0xe9   : > { %v1790_v36 = vadd.f32 %v560_v35, %v512_v34 }
  0xec   : > { %v531_v37 = vpop.f32.mrf.mxu2 }
  0xed   : > { %v532_v38 = vadd.f32 %v1343_v0, %v531_v37  ;;  %v580_v39 = vpop.f32.mrf.mxu3 }
  0xee   : > { %v513_v40 = vpop.f32.mrf.mxu0 }
  0xef   : > { %v1792_v41 = vadd.f32 %v580_v39, %v532_v38  ;;  %v514_v42 = vadd.f32 %v1343_v0, %v513_v40  ;;  %v562_v43 = vpop.f32.mrf.mxu1 }
  0xf1   : > { %v1794_v44 = vadd.f32 %v562_v43, %v514_v42 }
  0xf4   : > { %v533_v45 = vpop.f32.mrf.mxu2 }
  0xf5   : > { %v534_v46 = vadd.f32 %v1343_v0, %v533_v45  ;;  %v582_v47 = vpop.f32.mrf.mxu3 }
  0xf6   : > { %v516_v48 = vpop.f32.mrf.mxu0 }
  0xf7   : > { %v1796_v49 = vadd.f32 %v582_v47, %v534_v46  ;;  %v517_v50 = vadd.f32 %v1343_v0, %v516_v48  ;;  %v565_v51 = vpop.f32.mrf.mxu1 }
  0xf9   : > { %v1798_v52 = vadd.f32 %v565_v51, %v517_v50 }
  0xfc   : > { %v536_v53 = vpop.f32.mrf.mxu2 }
  0xfd   : > { %v537_v54 = vadd.f32 %v1343_v0, %v536_v53  ;;  %v585_v55 = vpop.f32.mrf.mxu3 }
  0xfe   : > { %v518_v56 = vpop.f32.mrf.mxu0 }
  0xff   : > { %v1800_v57 = vadd.f32 %v585_v55, %v537_v54  ;;  %v519_v58 = vadd.f32 %v1343_v0, %v518_v56  ;;  %v567_v59 = vpop.f32.mrf.mxu1 }
 0x101   : > { %v1802_v60 = vadd.f32 %v567_v59, %v519_v58 }
 0x103   : > { %593 = sbr.rel (%p1204_p7) target bundleno = 350 (0x15e), region = 48 }
 0x104   : > { %v538_v61 = vpop.f32.mrf.mxu2 }
 0x105   : > { %v539_v62 = vadd.f32 %v1343_v0, %v538_v61  ;;  %v587_v63 = vpop.f32.mrf.mxu3 }
 0x107   : > { %v1804_v1 = vadd.f32 %v587_v63, %v539_v62 }
 0x108   : > { %v642_v2 = vand.u32 2147483647, %v1774_v4  ;;  %v643_v3 = vand.u32 2147483647, %v1778_v12  ;;  %v644_v6 = vand.u32 2147483647, %v1782_v20  ;;  %vm610_vm0 = vcmp.ne.f32.partialorder %v1774_v4, %v1774_v4 }
 0x109   : > { %v645_v8 = vand.u32 2147483647, %v1786_v28  ;;  %v646_v11 = vand.u32 2147483647, %v1790_v36  ;;  %v647_v15 = vand.u32 2147483647, %v1794_v44  ;;  %vm611_vm2 = vcmp.ne.f32.partialorder %v1778_v12, %v1778_v12 }
 0x10a   : > { %v658_v5 = vsub.f32 0.0, %v642_v2  ;;  %v659_v7 = vsub.f32 0.0, %v643_v3  ;;  %v660_v10 = vsub.f32 0.0, %v644_v6  ;;  %v594_v19 = vmax.f32 %v1774_v4, 0.0 }
 0x10b   : > { %v661_v14 = vsub.f32 0.0, %v645_v8  ;;  %v662_v18 = vsub.f32 0.0, %v646_v11  ;;  %v663_v22 = vsub.f32 0.0, %v647_v15  ;;  %v595_v23 = vmax.f32 %v1778_v12, 0.0 }
 0x10c   : > { %v674_v0 = vmul.f32 1.442695, %v658_v5  ;;  %v676_v13 = vmul.f32 1.442695, %v659_v7  ;;  %v678_v16 = vmul.f32 1.442695, %v660_v10  ;;  %vm612_vm4 = vcmp.ne.f32.partialorder %v1782_v20, %v1782_v20 }
 0x10d   : > { %v680_v21 = vmul.f32 1.442695, %v661_v14  ;;  %v682_v24 = vmul.f32 1.442695, %v662_v18  ;;  %v648_v26 = vand.u32 2147483647, %v1798_v52  ;;  %vm613_vm6 = vcmp.ne.f32.partialorder %v1786_v28, %v1786_v28 }
 0x10e   : > { %1344 = vpow2.f32 %v674_v0  ;;  %v596_v27 = vmax.f32 %v1782_v20, 0.0  ;;  %v684_v29 = vmul.f32 1.442695, %v663_v22  ;;  %v649_v30 = vand.u32 2147483647, %v1802_v60 }
 0x10f   : > { %1346 = vpow2.f32 %v676_v13  ;;  %v664_v31 = vsub.f32 0.0, %v648_v26  ;;  %v650_v32 = vand.u32 2147483647, %v1776_v9  ;;  %v651_v34 = vand.u32 2147483647, %v1780_v17 }
 0x110   : > { %1348 = vpow2.f32 %v678_v16  ;;  %v597_v35 = vmax.f32 %v1786_v28, 0.0  ;;  %v598_v37 = vmax.f32 %v1790_v36, 0.0  ;;  %v599_v38 = vmax.f32 %v1794_v44, 0.0 }
 0x111   : > { %1350 = vpow2.f32 %v680_v21  ;;  %v665_v39 = vsub.f32 0.0, %v649_v30  ;;  %v686_v42 = vmul.f32 1.442695, %v664_v31  ;;  %v1827_v43 = vsub.f32 0.0, %v650_v32 }
 0x112   : > { %1352 = vpow2.f32 %v682_v24  ;;  %v652_v45 = vand.u32 2147483647, %v1784_v25  ;;  %v1830_v51 = vsub.f32 0.0, %v651_v34  ;;  %vm614_vm8 = vcmp.ne.f32.partialorder %v1790_v36, %v1790_v36 }
 0x113   : > { %1354 = vpow2.f32 %v684_v29  ;;  %v1832_v62 = vmul.f32 1.442695, %v665_v39  ;;  %vm615_vm10 = vcmp.ne.f32.partialorder %v1794_v44, %v1794_v44  ;;  %vm616_vm13 = vcmp.ne.f32.partialorder %v1798_v52, %v1798_v52 }
 0x114   : > { %v1345_v40 = vpop.eup %1344  ;;  %1356 = vpow2.f32 %v686_v42  ;;  %vm617_vm14 = vcmp.ne.f32.partialorder %v1802_v60, %v1802_v60  ;;  %vm618_vm15 = vcmp.ne.f32.partialorder %v1776_v9, %v1776_v9 }
 0x115   : > { %v1347_v46 = vpop.eup %1346  ;;  %v706_v47 = vadd.f32 1.0, %v1345_v40  ;;  %v709_v48 = vmul.f32 -0.5, %v1345_v40  ;;  %v712_v50 = vand.u32 2147483647, %v1345_v40 }
 0x116   : > { %v1349_v53 = vpop.eup %1348  ;;  %v715_v54 = vadd.f32 1.0, %v1347_v46  ;;  %v718_v55 = vmul.f32 -0.5, %v1347_v46  ;;  %v721_v56 = vand.u32 2147483647, %v1347_v46 }
 0x117   : > { %v1351_v58 = vpop.eup %1350  ;;  %1358 = vlog2.f32 %v706_v47  ;;  %v710_v59 = vadd.f32 1.0, %v709_v48  ;;  %v724_v61 = vadd.f32 1.0, %v1349_v53  ;;  %vm1836_vm1 = vcmp.lt.f32.partialorder %v712_v50, 0.0004427343 }
 0x118   : > { %v1353_v63 = vpop.eup %1352  ;;  %1360 = vlog2.f32 %v715_v54  ;;  %v719_v3 = vadd.f32 1.0, %v718_v55  ;;  %v727_v5 = vmul.f32 -0.5, %v1349_v53  ;;  %vm1842_vm3 = vcmp.lt.f32.partialorder %v721_v56, 0.0004427343 }
 0x119   : > { %1362 = vlog2.f32 %v724_v61  ;;  %v730_v7 = vand.u32 2147483647, %v1349_v53  ;;  %v733_v8 = vadd.f32 1.0, %v1351_v58  ;;  %v1355_v0 = vpop.eup %1354  ;;  %v711_v10 = vmul.f32 %v1345_v40, %v710_v59 }
 0x11a   : > { %v728_v11 = vadd.f32 1.0, %v727_v5  ;;  %v736_v13 = vmul.f32 -0.5, %v1351_v58  ;;  %v739_v14 = vand.u32 2147483647, %v1351_v58  ;;  %v720_v15 = vmul.f32 %v1347_v46, %v719_v3  ;;  %v1357_v21 = vpop.eup %1356 }
 0x11b   : > { %1364 = vlog2.f32 %v733_v8  ;;  %v742_v16 = vadd.f32 1.0, %v1353_v63  ;;  %v745_v18 = vmul.f32 -0.5, %v1353_v63  ;;  %vm1848_vm5 = vcmp.lt.f32.partialorder %v730_v7, 0.0004427343 }
 0x11c   : > { %v729_v22 = vmul.f32 %v1349_v53, %v728_v11  ;;  %v737_v26 = vadd.f32 1.0, %v736_v13  ;;  %v748_v29 = vand.u32 2147483647, %v1353_v63  ;;  %v751_v32 = vadd.f32 1.0, %v1355_v0 }
 0x11d   : > { %v1359_v30 = vpop.eup %1358  ;;  %1366 = vlog2.f32 %v742_v16  ;;  %v746_v31 = vadd.f32 1.0, %v745_v18  ;;  %v754_v34 = vmul.f32 -0.5, %v1355_v0  ;;  %vm1854_vm7 = vcmp.lt.f32.partialorder %v739_v14, 0.0004427343 }
 0x11e   : > { %v1361_v39 = vpop.eup %1360  ;;  %v708_v40 = vmul.f32 0.6931472, %v1359_v30  ;;  %v738_v42 = vmul.f32 %v1351_v58, %v737_v26  ;;  %vm1860_vm9 = vcmp.lt.f32.partialorder %v748_v29, 0.0004427343  ;;  %1368 = vlog2.f32 %v751_v32 }
 0x11f   : > { %v1363_v48 = vpop.eup %1362  ;;  %v717_v50 = vmul.f32 0.6931472, %v1361_v39  ;;  %v755_v53 = vadd.f32 1.0, %v754_v34  ;;  %v757_v54 = vand.u32 2147483647, %v1355_v0  ;;  %v747_v58 = vmul.f32 %v1353_v63, %v746_v31 }
 0x120   : > { %v714_v55 = vsel %vm1836_vm1, %v711_v10, %v708_v40  ;;  %v726_v56 = vmul.f32 0.6931472, %v1363_v48  ;;  %v760_v59 = vadd.f32 1.0, %v1357_v21  ;;  %v763_v8 = vmul.f32 -0.5, %v1357_v21 }
 0x121   : > { %v1365_v61 = vpop.eup %1364  ;;  %v850_v3 = vadd.f32 %v714_v55, %v594_v19  ;;  %v723_v5 = vsel %vm1842_vm3, %v720_v15, %v717_v50  ;;  %v756_v7 = vmul.f32 %v1355_v0, %v755_v53  ;;  %v766_v13 = vand.u32 2147483647, %v1357_v21 }
 0x122   : > { %v851_v11 = vadd.f32 %v723_v5, %v595_v23  ;;  %v732_v2 = vsel %vm1848_vm5, %v729_v22, %v726_v56  ;;  %v735_v63 = vmul.f32 0.6931472, %v1365_v61  ;;  %1370 = vlog2.f32 %v760_v59 }
 0x123   : > { %v1367_v10 = vpop.eup %1366  ;;  %v866_v19 = vsel %vm610_vm0, %v1774_v4, %v850_v3  ;;  %v852_v6 = vadd.f32 %v732_v2, %v596_v27  ;;  %v764_v0 = vadd.f32 1.0, %v763_v8  ;;  %vm1894_vm11 = vcmp.lt.f32.partialorder %v757_v54, 0.0004427343 }
 0x124   : > { %v882_v14 = vadd.f32 1e-07, %v866_v19  ;;  %v867_v23 = vsel %vm611_vm2, %v1778_v12, %v851_v11  ;;  %v741_v15 = vsel %vm1854_vm7, %v738_v42, %v735_v63  ;;  %v744_v16 = vmul.f32 0.6931472, %v1367_v10  ;;  %v1369_v18 = vpop.eup %1368 }
 0x125   : > { %v883_v22 = vadd.f32 1e-07, %v867_v23  ;;  %v868_v27 = vsel %vm612_vm4, %v1782_v20, %v852_v6  ;;  %v853_v24 = vadd.f32 %v741_v15, %v597_v35  ;;  %v753_v31 = vmul.f32 0.6931472, %v1369_v18 }
 0x126   : > { %898 = vst [vmem:[%s1808_s20] sm:$0xff] %v882_v14  ;;  %v884_v29 = vadd.f32 1e-07, %v868_v27  ;;  %v750_v30 = vsel %vm1860_vm9, %v747_v58, %v744_v16  ;;  %v765_v32 = vmul.f32 %v1357_v21, %v764_v0  ;;  %vm1908_vm12 = vcmp.lt.f32.partialorder %v766_v13, 0.0004427343 }
 0x127   : > { %899 = vst [vmem:[%s1808_s20 + $0x8] sm:$0xff] %v883_v22  ;;  %v869_v34 = vsel %vm613_vm6, %v1786_v28, %v853_v24  ;;  %v854_v35 = vadd.f32 %v750_v30, %v598_v37  ;;  %1372 = vpow2.f32 %v1832_v62  ;;  %v759_v21 = vsel %vm1894_vm11, %v756_v7, %v753_v31 }
 0x128   : > { %v1371_v40 = vpop.eup %1370  ;;  %900 = vst [vmem:[%s1808_s20 + $0x10] sm:$0xff] %v884_v29  ;;  %v885_v42 = vadd.f32 1e-07, %v869_v34  ;;  %v600_v46 = vmax.f32 %v1798_v52, 0.0  ;;  %v690_v47 = vmul.f32 1.442695, %v1827_v43  ;;  %v855_v48 = vadd.f32 %v759_v21, %v599_v38 }
 0x129   : > { %v870_v37 = vsel %vm614_vm8, %v1790_v36, %v854_v35  ;;  %v762_v62 = vmul.f32 0.6931472, %v1371_v40  ;;  %v653_v50 = vand.u32 2147483647, %v1788_v33  ;;  %v692_v54 = vmul.f32 1.442695, %v1830_v51 }
 0x12a   : > { %901 = vst [vmem:[%s1808_s20 + $0x18] sm:$0xff] %v885_v42  ;;  %v886_v53 = vadd.f32 1e-07, %v870_v37  ;;  %1374 = vpow2.f32 %v690_v47  ;;  %v871_v43 = vsel %vm615_vm10, %v1794_v44, %v855_v48  ;;  %v654_v55 = vand.u32 2147483647, %v1792_v41 }
 0x12b   : > { %v768_v38 = vsel %vm1908_vm12, %v765_v32, %v762_v62  ;;  %v887_v56 = vadd.f32 1e-07, %v871_v43  ;;  %1376 = vpow2.f32 %v692_v54  ;;  %v668_v51 = vsub.f32 0.0, %v652_v45 }
 0x12c   : > { %902 = vst [vmem:[%s1808_s20 + $0x20] sm:$0xff] %v886_v53  ;;  %v856_v58 = vadd.f32 %v768_v38, %v600_v46  ;;  %v669_v61 = vsub.f32 0.0, %v653_v50  ;;  %v601_v10 = vmax.f32 %v1802_v60, 0.0  ;;  %v670_v19 = vsub.f32 0.0, %v654_v55 }
 0x12d   : > { %v1373_v59 = vpop.eup %1372  ;;  %903 = vst [vmem:[%s1808_s20 + $0x28] sm:$0xff] %v887_v56  ;;  %v694_v11 = vmul.f32 1.442695, %v668_v51  ;;  %v602_v16 = vmax.f32 %v1776_v9, 0.0  ;;  %v603_v27 = vmax.f32 %v1780_v17, 0.0  ;;  %v604_v30 = vmax.f32 %v1784_v25, 0.0 }
 0x12e   : > { %v872_v3 = vsel %vm616_vm13, %v1798_v52, %v856_v58  ;;  %v769_v5 = vadd.f32 1.0, %v1373_v59  ;;  %v772_v7 = vmul.f32 -0.5, %v1373_v59  ;;  %v696_v2 = vmul.f32 1.442695, %v669_v61 }
 0x12f   : > { %v888_v8 = vadd.f32 1e-07, %v872_v3  ;;  %v775_v14 = vand.u32 2147483647, %v1373_v59  ;;  %v698_v15 = vmul.f32 1.442695, %v670_v19  ;;  %vm619_vm2 = vcmp.ne.f32.partialorder %v1780_v17, %v1780_v17 }
 0x130   : > { %v1375_v63 = vpop.eup %1374  ;;  %1378 = vlog2.f32 %v769_v5  ;;  %v773_v45 = vadd.f32 1.0, %v772_v7  ;;  %v655_v31 = vand.u32 2147483647, %v1796_v49  ;;  %v605_v40 = vmax.f32 %v1788_v33, 0.0 }
 0x131   : > { %904 = vst [vmem:[%s1808_s20 + $0x30] sm:$0xff] %v888_v8  ;;  %v778_v6 = vadd.f32 1.0, %v1375_v63  ;;  %v781_v0 = vmul.f32 -0.5, %v1375_v63  ;;  %1380 = vpow2.f32 %v694_v11  ;;  %v1377_v13 = vpop.eup %1376  ;;  %v784_v23 = vand.u32 2147483647, %v1375_v63 }
 0x132   : > { %1382 = vpow2.f32 %v696_v2  ;;  %v787_v22 = vadd.f32 1.0, %v1377_v13  ;;  %v790_v24 = vmul.f32 -0.5, %v1377_v13  ;;  %v793_v26 = vand.u32 2147483647, %v1377_v13 }
 0x133   : > { %1384 = vlog2.f32 %v778_v6  ;;  %v782_v18 = vadd.f32 1.0, %v781_v0  ;;  %v774_v29 = vmul.f32 %v1373_v59, %v773_v45  ;;  %vm1951_vm0 = vcmp.lt.f32.partialorder %v775_v14, 0.0004427343 }
 0x134   : > { %1386 = vpow2.f32 %v698_v15  ;;  %vm1955_vm1 = vcmp.lt.f32.partialorder %v784_v23, 0.0004427343  ;;  %v791_v39 = vadd.f32 1.0, %v790_v24  ;;  %vm1962_vm3 = vcmp.lt.f32.partialorder %v793_v26, 0.0004427343 }
 0x135   : > { %1388 = vlog2.f32 %v787_v22  ;;  %v783_v46 = vmul.f32 %v1375_v63, %v782_v18  ;;  %v671_v37 = vsub.f32 0.0, %v655_v31  ;;  %v656_v11 = vand.u32 2147483647, %v1800_v57 }
 0x136   : > { %v1379_v32 = vpop.eup %1378  ;;  %v792_v62 = vmul.f32 %v1377_v13, %v791_v39  ;;  %vm620_vm6 = vcmp.ne.f32.partialorder %v1784_v25, %v1784_v25  ;;  %vm621_vm7 = vcmp.ne.f32.partialorder %v1788_v33, %v1788_v33  ;;  %vm622_vm9 = vcmp.ne.f32.partialorder %v1792_v41, %v1792_v41 }
 0x137   : > { %v1381_v42 = vpop.eup %1380  ;;  %v771_v21 = vmul.f32 0.6931472, %v1379_v32  ;;  %v700_v18 = vmul.f32 1.442695, %v671_v37  ;;  %v672_v26 = vsub.f32 0.0, %v656_v11  ;;  %vm623_vm11 = vcmp.ne.f32.partialorder %v1796_v49, %v1796_v49 }
 0x138   : > { %v1383_v48 = vpop.eup %1382  ;;  %v796_v50 = vadd.f32 1.0, %v1381_v42  ;;  %v799_v53 = vmul.f32 -0.5, %v1381_v42  ;;  %v802_v54 = vand.u32 2147483647, %v1381_v42  ;;  %vm624_vm13 = vcmp.ne.f32.partialorder %v1800_v57, %v1800_v57 }
 0x139   : > { %v1385_v43 = vpop.eup %1384  ;;  %v777_v38 = vsel %vm1951_vm0, %v774_v29, %v771_v21  ;;  %v805_v55 = vadd.f32 1.0, %v1383_v48  ;;  %v808_v56 = vmul.f32 -0.5, %v1383_v48  ;;  %v811_v58 = vand.u32 2147483647, %v1383_v48 }
 0x13a   : > { %v1387_v51 = vpop.eup %1386  ;;  %v857_v59 = vadd.f32 %v777_v38, %v601_v10  ;;  %v780_v61 = vmul.f32 0.6931472, %v1385_v43  ;;  %1390 = vlog2.f32 %v796_v50  ;;  %v800_v3 = vadd.f32 1.0, %v799_v53 }
 0x13b   : > { %v1389_v5 = vpop.eup %1388  ;;  %vm1968_vm4 = vcmp.lt.f32.partialorder %v802_v54, 0.0004427343  ;;  %1392 = vlog2.f32 %v805_v55  ;;  %v809_v8 = vadd.f32 1.0, %v808_v56  ;;  %vm1979_vm5 = vcmp.lt.f32.partialorder %v811_v58, 0.0004427343 }
 0x13c   : > { %v873_v2 = vsel %vm617_vm14, %v1802_v60, %v857_v59  ;;  %v786_v63 = vsel %vm1955_vm1, %v783_v46, %v780_v61  ;;  %v789_v10 = vmul.f32 0.6931472, %v1389_v5  ;;  %v801_v0 = vmul.f32 %v1381_v42, %v800_v3 }
 0x13d   : > { %v889_v45 = vadd.f32 1e-07, %v873_v2  ;;  %v858_v6 = vadd.f32 %v786_v63, %v602_v16  ;;  %v814_v13 = vadd.f32 1.0, %v1387_v51  ;;  %v810_v23 = vmul.f32 %v1383_v48, %v809_v8 }
 0x13e   : > { %v795_v14 = vsel %vm1962_vm3, %v792_v62, %v789_v10  ;;  %v817_v15 = vmul.f32 -0.5, %v1387_v51  ;;  %v820_v32 = vand.u32 2147483647, %v1387_v51  ;;  %v702_v42 = vmul.f32 1.442695, %v672_v26 }
 0x13f   : > { %905 = vst [vmem:[%s1808_s20 + $0x38] sm:$0xff] %v889_v45  ;;  %v874_v22 = vsel %vm618_vm15, %v1776_v9, %v858_v6  ;;  %v859_v24 = vadd.f32 %v795_v14, %v603_v27  ;;  %1394 = vlog2.f32 %v814_v13  ;;  %v657_v21 = vand.u32 2147483647, %v1804_v1 }
 0x140   : > { %v1391_v29 = vpop.eup %1390  ;;  %v890_v16 = vadd.f32 1e-07, %v874_v22  ;;  %v818_v31 = vadd.f32 1.0, %v817_v15  ;;  %1396 = vpow2.f32 %v700_v18  ;;  %v606_v43 = vmax.f32 %v1792_v41, 0.0 }
 0x141   : > { %v1393_v34 = vpop.eup %1392  ;;  %v875_v35 = vsel %vm619_vm2, %v1780_v17, %v859_v24  ;;  %v798_v39 = vmul.f32 0.6931472, %v1391_v29  ;;  %1398 = vpow2.f32 %v702_v42  ;;  %v673_v37 = vsub.f32 0.0, %v657_v21 }
 0x142   : > { %906 = vst [vmem:[%s1808_s20 + $0x40] sm:$0xff] %v890_v16  ;;  %v891_v27 = vadd.f32 1e-07, %v875_v35  ;;  %v807_v46 = vmul.f32 0.6931472, %v1393_v34  ;;  %v819_v50 = vmul.f32 %v1387_v51, %v818_v31  ;;  %v608_v16 = vmax.f32 %v1800_v57, 0.0 }
 0x143   : > { %v804_v47 = vsel %vm1968_vm4, %v801_v0, %v798_v39  ;;  %vm821_vm8 = vcmp.lt.f32.partialorder %v820_v32, 0.0004427343  ;;  %v704_v38 = vmul.f32 1.442695, %v673_v37  ;;  %v609_v37 = vmax.f32 %v1804_v1, 0.0 }
 0x144   : > { %907 = vst [vmem:[%s1808_s20 + $0x48] sm:$0xff] %v891_v27  ;;  %v860_v48 = vadd.f32 %v804_v47, %v604_v30  ;;  %v813_v62 = vsel %vm1979_vm5, %v810_v23, %v807_v46  ;;  %v607_v23 = vmax.f32 %v1796_v49, 0.0  ;;  %vm625_vm15 = vcmp.ne.f32.partialorder %v1804_v1, %v1804_v1 }
 0x145   : > { %v1395_v53 = vpop.eup %1394  ;;  %v861_v54 = vadd.f32 %v813_v62, %v605_v40  ;;  %1400 = vpow2.f32 %v704_v38 }
 0x146   : > { %v1397_v55 = vpop.eup %1396  ;;  %v876_v30 = vsel %vm620_vm6, %v1784_v25, %v860_v48  ;;  %v816_v56 = vmul.f32 0.6931472, %v1395_v53 }
 0x147   : > { %v892_v58 = vadd.f32 1e-07, %v876_v30  ;;  %v877_v59 = vsel %vm621_vm7, %v1788_v33, %v861_v54  ;;  %v823_v61 = vadd.f32 1.0, %v1397_v55  ;;  %v826_v3 = vmul.f32 -0.5, %v1397_v55  ;;  %v1399_v5 = vpop.eup %1398 }
 0x148   : > { %v893_v51 = vadd.f32 1e-07, %v877_v59  ;;  %v822_v40 = vsel %vm821_vm8, %v819_v50, %v816_v56  ;;  %v832_v11 = vadd.f32 1.0, %v1399_v5  ;;  %v835_v2 = vmul.f32 -0.5, %v1399_v5 }
 0x149   : > { %908 = vst [vmem:[%s1808_s20 + $0x50] sm:$0xff] %v892_v58  ;;  %v862_v7 = vadd.f32 %v822_v40, %v606_v43  ;;  %1402 = vlog2.f32 %v823_v61  ;;  %v827_v8 = vadd.f32 1.0, %v826_v3  ;;  %v829_v10 = vand.u32 2147483647, %v1397_v55 }
 0x14a   : > { %909 = vst [vmem:[%s1808_s20 + $0x58] sm:$0xff] %v893_v51  ;;  %1404 = vlog2.f32 %v832_v11  ;;  %v836_v45 = vadd.f32 1.0, %v835_v2  ;;  %v838_v13 = vand.u32 2147483647, %v1399_v5 }
 0x14b   : > { %v878_v63 = vsel %vm622_vm9, %v1792_v41, %v862_v7  ;;  %v1401_v6 = vpop.eup %1400  ;;  %v828_v0 = vmul.f32 %v1397_v55, %v827_v8  ;;  %vm830_vm10 = vcmp.lt.f32.partialorder %v829_v10, 0.0004427343 }
 0x14c   : > { %v894_v19 = vadd.f32 1e-07, %v878_v63  ;;  %v841_v15 = vadd.f32 1.0, %v1401_v6  ;;  %v844_v18 = vmul.f32 -0.5, %v1401_v6  ;;  %v837_v24 = vmul.f32 %v1399_v5, %v836_v45 }
 0x14d   : > { %vm839_vm12 = vcmp.lt.f32.partialorder %v838_v13, 0.0004427343  ;;  %v847_v35 = vand.u32 2147483647, %v1401_v6 }
 0x14e   : > { %910 = vst [vmem:[%s1808_s20 + $0x60] sm:$0xff] %v894_v19  ;;  %1406 = vlog2.f32 %v841_v15  ;;  %v845_v31 = vadd.f32 1.0, %v844_v18 }
 0x14f   : > { %v1403_v14 = vpop.eup %1402  ;;  %vm848_vm14 = vcmp.lt.f32.partialorder %v847_v35, 0.0004427343 }
 0x150   : > { %v825_v22 = vmul.f32 0.6931472, %v1403_v14  ;;  %v1405_v26 = vpop.eup %1404  ;;  %v846_v46 = vmul.f32 %v1401_v6, %v845_v31 }
 0x151   : > { %v834_v34 = vmul.f32 0.6931472, %v1405_v26 }
 0x152   : > { %v831_v29 = vsel %vm830_vm10, %v828_v0, %v825_v22 }
 0x153   : > { %v863_v32 = vadd.f32 %v831_v29, %v607_v23  ;;  %v840_v42 = vsel %vm839_vm12, %v837_v24, %v834_v34 }
 0x154   : > { %v864_v27 = vadd.f32 %v840_v42, %v608_v16  ;;  %v1407_v47 = vpop.eup %1406 }
 0x155   : > { %v879_v39 = vsel %vm623_vm11, %v1796_v49, %v863_v32  ;;  %v843_v62 = vmul.f32 0.6931472, %v1407_v47 }
 0x156   : > { %v895_v21 = vadd.f32 1e-07, %v879_v39  ;;  %v880_v48 = vsel %vm624_vm13, %v1800_v57, %v864_v27 }
 0x157   : > { %v896_v50 = vadd.f32 1e-07, %v880_v48  ;;  %v849_v53 = vsel %vm848_vm14, %v846_v46, %v843_v62 }
 0x158   : > { %911 = vst [vmem:[%s1808_s20 + $0x68] sm:$0xff] %v895_v21  ;;  %v865_v54 = vadd.f32 %v849_v53, %v609_v37 }
 0x159   : > { %912 = vst [vmem:[%s1808_s20 + $0x70] sm:$0xff] %v896_v50 }
 0x15a   : > { %v881_v43 = vsel %vm625_vm15, %v1804_v1, %v865_v54 }
 0x15b   : > { %v897_v38 = vadd.f32 1e-07, %v881_v43 }
 0x15d   : > { %913 = vst [vmem:[%s1808_s20 + $0x78] sm:$0xff] %v897_v38 }
 0x15e PF: > { %p1205_p8 = scmp.ge.s32.totalorder %s1576_s15, 1 }
 0x160   : > { %917 = sbr.rel (%p1205_p8) target bundleno = 373 (0x175), region = 52 }
 0x165   : > { %918 = vst [vmem:[%s1808_s20] sm:$0xff] %v1774_v4 }
 0x166   : > { %919 = vst [vmem:[%s1808_s20 + $0x8] sm:$0xff] %v1778_v12 }
 0x167   : > { %920 = vst [vmem:[%s1808_s20 + $0x10] sm:$0xff] %v1782_v20 }
 0x168   : > { %921 = vst [vmem:[%s1808_s20 + $0x18] sm:$0xff] %v1786_v28 }
 0x169   : > { %922 = vst [vmem:[%s1808_s20 + $0x20] sm:$0xff] %v1790_v36 }
 0x16a   : > { %923 = vst [vmem:[%s1808_s20 + $0x28] sm:$0xff] %v1794_v44 }
 0x16b   : > { %924 = vst [vmem:[%s1808_s20 + $0x30] sm:$0xff] %v1798_v52 }
 0x16c   : > { %925 = vst [vmem:[%s1808_s20 + $0x38] sm:$0xff] %v1802_v60 }
 0x16d   : > { %926 = vst [vmem:[%s1808_s20 + $0x40] sm:$0xff] %v1776_v9 }
 0x16e   : > { %927 = vst [vmem:[%s1808_s20 + $0x48] sm:$0xff] %v1780_v17 }
 0x16f   : > { %928 = vst [vmem:[%s1808_s20 + $0x50] sm:$0xff] %v1784_v25 }
 0x170   : > { %929 = vst [vmem:[%s1808_s20 + $0x58] sm:$0xff] %v1788_v33 }
 0x171   : > { %930 = vst [vmem:[%s1808_s20 + $0x60] sm:$0xff] %v1792_v41 }
 0x172   : > { %931 = vst [vmem:[%s1808_s20 + $0x68] sm:$0xff] %v1796_v49 }
 0x173   : > { %932 = vst [vmem:[%s1808_s20 + $0x70] sm:$0xff] %v1800_v57 }
 0x174   : > { %933 = vst [vmem:[%s1808_s20 + $0x78] sm:$0xff] %v1804_v1 }
 0x175 PF: > { %s1207_s27 = sshll.u32 %s1576_s15, 3  ;;  %s949_s5 = sshll.u32 %s1808_s20, 4  ;;  %s950_s5 = int_to_ptr.vmem [resolvable:$true] %s949_s5 }
 0x176   : > { %s948_s4 = scalar_lea.hbm %s2108_s3, %s1207_s27  ;;  %s935_s10 = scalar_lea.sflag [#allocation4], %s1744_s29 }
 0x177   : > { %s951_s9 = sshll.u32 %s948_s4, 4  ;;  %s1518_s15 = scalar_lea.hbm %s2108_s3, 256  ;;  %s952_s9 = int_to_ptr.hbm [resolvable:$true] %s951_s9 }
 0x178   : > { %s1512_s19 = sshra.s32 %s952_s9, 4  ;;  %s1513_s19 = int_to_ptr.hbm [resolvable:$true] %s1512_s19 }
 0x179   : > { %s1514_s25 = scalar_lea.hbm %s1513_s19, 128  ;;  %p1519_p12 = scmp.lt.s32.totalorder %s1513_s19, %s2108_s3 }
 0x17a   : > { %p1515_p9 = scmp.ne.s32.totalorder %s1513_s19, %s1514_s25  ;;  %p1520_p13 = scmp.lt.s32.totalorder %s1518_s15, %s1514_s25 }
 0x17c   : > { %p1516_p10 = pnand %p1515_p9, %p1705_p0  ;;  %p1521_p3 = por %p1520_p13, %p1519_p12 }
 0x17e   : > { %p1517_p11 = pneg %p1516_p10 }
 0x180   : > { %p1522_p5 = pnand %p1521_p3, %p1517_p11 }
 0x182   : > { %1525 = shalt.err (!%p1522_p5)
}
 0x183   : > { %s1591_s29 = smov 128   ;;  %s1592_s7 = smov 256  }
 0x184   : > { %s1593_s11 = smov 8  }
 0x185   : > { %1266 = dma.vmem_to_hbm [thread:$0]  (%p1705_p0), %s950_s5, 2048, %s952_s9, %s935_s10, %s1591_s29, %s1592_s7, %s1593_s11  }
 0x186 PF: > { %s966_s20 = sand.u32 1, %s1564_s12   ;;  %p1280_p1 = pnand %p1069_p4, %p1709_p2 }
 0x187   : > { %s967_s27 = scalar_lea.sflag [#allocation4], %s966_s20 }
 0x188   : > { %p1281_p6 = pneg %p1280_p1 }
 0x18a   : > { %1559 = dma.done.wait (%p1281_p6), %s967_s27, 2048  }
 0x18b   : > { %1561 = vsyncadd (%p1281_p6), %s967_s27, 4294965248  ;;  %s20_s17 = sadd.s32 1, %s1584_s17   ;;  %s2139_s12 = smov %s1568_s13 }
 0x18c   : > { %p17_p7 = scmp.ge.s32.totalorder %s20_s17, 4   ;;  %s2140_s13 = smov %s1572_s14 }
 0x18d   : > { %s2141_s14 = smov %s1665_s24  ;;  %s2142_s15 = smov %s1580_s16 }
 0x18e   : > { %s2143_s16 = smov %s2145_s18  ;;  %19 = sbr.rel (!%p17_p7) target bundleno = 7 (0x7), region = 102 }
 0x193   :  { %973 = vsyncpa [#allocation3], 1 }
 0x194   :  { %975 = vsyncpa [#allocation3 + $0x1], 1 }
 0x195   :  { %976 = vsyncpa [#allocation6], 1 }
 0x196   :  { %978 = vsyncpa [#allocation6 + $0x1], 1 }
 0x197   :  { %979 = vsyncpa [#allocation4], 1 }
 0x198   :  { %981 = vsyncpa [#allocation4 + $0x1], 1 }

</bundles_post_ra>
